<compile_context>
chip_gen: v7x
topology: tpu7x:2x2x1
jax: 0.10.0
libtpu: 0.0.40
codegen_flags: <defaults>
</compile_context>

<pallas_src>
import functools
import math

import jax
import jax.numpy as jnp
from jax import lax
from jax.experimental import pallas as pl
from jax.experimental.pallas import tpu as pltpu


def _round_up(x: int, m: int) -> int:
    return (x + m - 1) // m * m


def _vmem_capacity_bytes() -> int:
    try:
        return int(pltpu.get_tpu_info().vmem_capacity_bytes)
    except Exception:
        return 64 * 1024 * 1024   # v7x per-TensorCore VMEM (smallest generation)


def _choose_tok_block(num_tokens: int, cap: int) -> int:
    """Largest multiple of 8 <= cap that divides num_tokens and leaves >=2 blocks."""
    cap = max(8, (cap // 8) * 8)
    start = min(cap, (num_tokens // 2 // 8) * 8)
    for tb in range(start, 7, -8):
        if num_tokens % tb == 0:
            return tb
    # Tiny / awkward token counts: single (padded) block.
    return min(cap, _round_up(max(num_tokens, 1), 8))


def _embed_resident_kernel(ids_ref, table_ref, out_ref, *, tok_block, scale):
    """Gather from a VMEM-resident table with per-token dynamic row slices.

    ids_ref:   (padded_tokens,) int32 in SMEM (scalar-prefetched, full array)
    table_ref: (vocab, dim_p)   VMEM-resident (constant index_map)
    out_ref:   (tok_block, dim_p) output tile
    """
    base = pl.program_id(0) * tok_block

    def body(t, carry):
        tok_id = ids_ref[base + t]
        out_ref[pl.ds(t, 1), :] = table_ref[pl.ds(tok_id, 1), :] * scale
        return carry

    lax.fori_loop(0, tok_block, body, 0)


def _embed_dma_kernel(ids_ref, table_ref, out_ref, rows_ref, copy_sems, *,
                      tok_block, queue, scale):
    """Row gather straight from HBM with a deep queue of outstanding row DMAs.

    ids_ref:   (padded_tokens,) int32 in SMEM (scalar-prefetched)
    table_ref: (vocab, dim_p)   stays in HBM (memory_space=pl.ANY)
    out_ref:   (tok_block, dim_p) output tile (VMEM)
    rows_ref:  (tok_block, dim_p) VMEM staging buffer for gathered rows
    copy_sems: (queue,) DMA semaphores — `queue` row copies in flight
    """
    base = pl.program_id(0) * tok_block

    def row_copy(t):
        tok_id = ids_ref[base + t]
        return pltpu.make_async_copy(
            table_ref.at[pl.ds(tok_id, 1), :],
            rows_ref.at[pl.ds(t, 1), :],
            copy_sems.at[t % queue],
        )

    # Prime the queue (static unroll — t is a Python int here).
    for t in range(min(queue, tok_block)):
        row_copy(t).start()

    def body(t, carry):
        row_copy(t).wait()                 # row t has landed in rows_ref
        @pl.when(t + queue < tok_block)
        def _():
            row_copy(t + queue).start()    # keep `queue` copies in flight
        return carry

    lax.fori_loop(0, tok_block, body, 0)

    # All rows landed: one lane-dense, fully vectorised scale + store.
    out_ref[...] = rows_ref[...] * scale


def embedding_forward(x, emb_table, *, tok_block=None, queue_depth=8,
                      force_hbm_gather=False):
    """Returns emb_table[x] * sqrt(dim_word) for integer token ids `x`."""
    lead_shape = x.shape
    num_tokens = int(math.prod(lead_shape)) if lead_shape else 1
    vocab, dim_word = emb_table.shape
    itemsize = emb_table.dtype.itemsize
    scale = float(math.sqrt(dim_word))
    queue_depth = max(1, int(queue_depth))   # raise (e.g. 16) on v7x's 3.2 TB/s HBM

    # Lane-dense last dim: pad to a multiple of 128 so output stores are
    # unmasked full-lane vst (biggest single lever for mem-bound kernels).
    dim_p = _round_up(dim_word, 128)
    table = emb_table if dim_p == dim_word else jnp.pad(
        emb_table, ((0, 0), (0, dim_p - dim_word)))
    table_bytes = vocab * dim_p * itemsize

    # Generation-aware VMEM budget (v7x: 64 MiB/TC, v5e/v6e: 128 MiB).
    vmem_cap = _vmem_capacity_bytes()
    budget = (vmem_cap * 6) // 10            # headroom for compiler scratch

    if tok_block is None:
        cap = (budget // 4) // max(1, 2 * dim_p * itemsize)
        cap = max(8, min(1024, (cap // 8) * 8))
        tok_block = _choose_tok_block(num_tokens, cap)
    tok_block = max(8, _round_up(int(tok_block), 8))
    padded_tokens = _round_up(num_tokens, tok_block)
    num_blocks = padded_tokens // tok_block

    ids = x.reshape(-1).astype(jnp.int32)
    if padded_tokens != num_tokens:
        ids = jnp.pad(ids, (0, padded_tokens - num_tokens))   # padded rows -> id 0

    out_block_bytes = 2 * tok_block * dim_p * itemsize        # double-buffered out
    # Budget the table at 2x so correctness does not depend on Buffered(1)
    # being available; single-buffering (below) only reduces actual usage.
    resident_bytes = 2 * table_bytes + out_block_bytes
    use_resident = (not force_hbm_gather) and (resident_bytes <= budget)

    if use_resident:
        vmem_needed = resident_bytes
        bytes_accessed = (padded_tokens * 4 + table_bytes
                          + padded_tokens * dim_p * itemsize)
    else:
        vmem_needed = out_block_bytes + tok_block * dim_p * itemsize
        bytes_accessed = padded_tokens * 4 + 2 * padded_tokens * dim_p * itemsize

    vmem_limit = int(min(vmem_cap * 9 // 10,
                         max(32 * 1024 * 1024, vmem_needed + (8 << 20))))
    compiler_params = pltpu.CompilerParams(
        dimension_semantics=("parallel",),    # shard blocks over v7x's 2 TCs
        vmem_limit_bytes=vmem_limit,          # v5e default scoped limit is 16 MiB
    )
    # Memory-bound cost estimate: flops ~ the scale multiply only.
    cost = pl.CostEstimate(flops=padded_tokens * dim_p, transcendentals=0,
                           bytes_accessed=int(bytes_accessed))
    out_shape = jax.ShapeDtypeStruct((padded_tokens, dim_p), table.dtype)
    out_spec = pl.BlockSpec((tok_block, dim_p), lambda i, ids_ref: (i, 0))

    if use_resident:
        kernel = functools.partial(_embed_resident_kernel,
                                   tok_block=tok_block, scale=scale)

        def call(single_buffer_table):
            kwargs = ({"pipeline_mode": pl.Buffered(1)}
                      if single_buffer_table else {})
            table_spec = pl.BlockSpec((vocab, dim_p),
                                      lambda i, ids_ref: (0, 0), **kwargs)
            return pl.pallas_call(
                kernel,
                grid_spec=pltpu.PrefetchScalarGridSpec(
                    num_scalar_prefetch=1,
                    grid=(num_blocks,),
                    in_specs=[table_spec],
                    out_specs=out_spec,
                ),
                out_shape=out_shape,
                compiler_params=compiler_params,
                cost_estimate=cost,
            )(ids, table)

        try:
            # Constant index_map + single buffer: table DMA'd to VMEM once,
            # not duplicated (halves the resident footprint).
            out_flat = call(single_buffer_table=True)
        except Exception:
            # Fallback for jax versions without BlockSpec.pipeline_mode /
            # Buffered(1): default double-buffered resident table.
            out_flat = call(single_buffer_table=False)
    else:
        kernel = functools.partial(_embed_dma_kernel, tok_block=tok_block,
                                   queue=queue_depth, scale=scale)
        out_flat = pl.pallas_call(
            kernel,
            grid_spec=pltpu.PrefetchScalarGridSpec(
                num_scalar_prefetch=1,
                grid=(num_blocks,),
                in_specs=[pl.BlockSpec(memory_space=pl.ANY)],  # table stays in HBM
                out_specs=out_spec,
                scratch_shapes=[
                    pltpu.VMEM((tok_block, dim_p), table.dtype),
                    pltpu.SemaphoreType.DMA((queue_depth,)),
                ],
            ),
            out_shape=out_shape,
            compiler_params=compiler_params,
            cost_estimate=cost,
        )(ids, table)

    # No-op when tok_block divides B*S and dim_word is already 128-aligned.
    out = out_flat[:num_tokens, :dim_word]
    return out.reshape(*lead_shape, dim_word)


if __name__ == "__main__":
    key = jax.random.PRNGKey(0)
    k_emb, k_ids, k_emb2, k_ids2 = jax.random.split(key, 4)

    # Small shapes consistent with the module: batch=2, seq=8, dim_word=128,
    # vocab=64 -> exercises the VMEM-resident gather path with 2 token blocks.
    B, S, dim_word, vocab = 2, 8, 128, 64
    emb_table = jax.random.normal(k_emb, (vocab, dim_word), dtype=jnp.float32)
    x = jax.random.randint(k_ids, (B, S), minval=0, maxval=vocab, dtype=jnp.int32)

    out = jax.block_until_ready(embedding_forward(x, emb_table))
    ref = emb_table[x] * math.sqrt(dim_word)
    assert out.shape == (B, S, dim_word)
    assert jnp.allclose(out, ref, atol=1e-5, rtol=1e-6), float(
        jnp.max(jnp.abs(out - ref)))

    # Exercise the large-vocab path (table left in HBM, queued row DMAs).
    B2, S2, dim2, vocab2 = 2, 24, 256, 512
    emb_table2 = jax.random.normal(k_emb2, (vocab2, dim2), dtype=jnp.float32)
    x2 = jax.random.randint(k_ids2, (B2, S2), minval=0, maxval=vocab2,
                            dtype=jnp.int32)
    out2 = jax.block_until_ready(
        embedding_forward(x2, emb_table2, force_hbm_gather=True))
    ref2 = emb_table2[x2] * math.sqrt(dim2)
    assert out2.shape == (B2, S2, dim2)
    assert jnp.allclose(out2, ref2, atol=1e-5, rtol=1e-6), float(
        jnp.max(jnp.abs(out2 - ref2)))

    print("KERNEL_OK")
</pallas_src>

<mosaic_0001>
module attributes {stable_mosaic.version = 11 : i64} {
  func.func @_embed_resident_kernel(%arg0: i32, %arg1: memref<16xi32, #tpu.memory_space<smem>>, %arg2: memref<64x128xf32, #tpu.memory_space<vmem>>, %arg3: memref<8x128xf32, #tpu.memory_space<vmem>>) attributes {dimension_semantics = [#tpu.dimension_semantics<parallel>], iteration_bounds = array<i64: 2>, scalar_prefetch = 1 : i64, scratch_operands = 0 : i64, tpu.core_type = #tpu.core_type<tc>, window_params = [{pipeline_mode = #tpu.pipeline_mode<synchronous>, transform_indices = @transform_0, window_bounds = array<i64: 64, 128>}, {transform_indices = @transform_1, window_bounds = array<i64: 8, 128>}]} {
    %c8_i32 = arith.constant 8 : i32
    %0 = arith.muli %arg0, %c8_i32 : i32
    %c0_i32 = arith.constant 0 : i32
    %c8_i32_0 = arith.constant 8 : i32
    %1 = arith.addi %c0_i32, %c8_i32_0 : i32
    %c1_i32 = arith.constant 1 : i32
    scf.for %arg4 = %c0_i32 to %1 step %c1_i32  : i32 {
      %2 = arith.addi %0, %arg4 : i32
      %3 = arith.index_cast %2 : i32 to index
      %4 = memref.load %arg1[%3] : memref<16xi32, #tpu.memory_space<smem>>
      %5 = arith.index_cast %4 : i32 to index
      %c0 = arith.constant 0 : index
      %6 = vector.load %arg2[%5, %c0] : memref<64x128xf32, #tpu.memory_space<vmem>>, vector<1x128xf32>
      %cst = arith.constant 11.3137083 : f32
      %7 = vector.broadcast %cst : f32 to vector<1x128xf32>
      %8 = arith.mulf %6, %7 : vector<1x128xf32>
      %9 = arith.index_cast %arg4 : i32 to index
      %c0_2 = arith.constant 0 : index
      %10 = vector.load %arg3[%9, %c0_2] : memref<8x128xf32, #tpu.memory_space<vmem>>, vector<1x128xf32>
      tpu.vector_store %arg3[%9, %c0_2], %8 {strides = array<i32>} : memref<8x128xf32, #tpu.memory_space<vmem>>, vector<1x128xf32>,
    }
    %c8_i32_1 = arith.constant 8 : i32
    return
  }
  func.func @transform_0(%arg0: i32, %arg1: memref<16xi32, #tpu.memory_space<smem>>) -> (i32, i32) {
    %c0_i32 = arith.constant 0 : i32
    %c0_i32_0 = arith.constant 0 : i32
    %c0_i32_1 = arith.constant 0 : i32
    return %c0_i32, %c0_i32_0 : i32, i32
  }
  func.func @transform_1(%arg0: i32, %arg1: memref<16xi32, #tpu.memory_space<smem>>) -> (i32, i32) {
    %c0_i32 = arith.constant 0 : i32
    %c0_i32_0 = arith.constant 0 : i32
    return %arg0, %c0_i32 : i32, i32
  }
}

module attributes {stable_mosaic.version = 11 : i64} {
  func.func @_embed_resident_kernel(%arg0: i32, %arg1: memref<16xi32, #tpu.memory_space<smem>>, %arg2: memref<64x128xf32, #tpu.memory_space<vmem>>, %arg3: memref<8x128xf32, #tpu.memory_space<vmem>>) attributes {dimension_semantics = [#tpu.dimension_semantics<parallel>], iteration_bounds = array<i64: 2>, scalar_prefetch = 1 : i64, scratch_operands = 0 : i64, tpu.core_type = #tpu.core_type<tc>, window_params = [{pipeline_mode = #tpu.pipeline_mode<synchronous>, transform_indices = @transform_0, window_bounds = array<i64: 64, 128>}, {transform_indices = @transform_1, window_bounds = array<i64: 8, 128>}]} {
    %c8_i32 = arith.constant 8 : i32
    %0 = arith.muli %arg0, %c8_i32 : i32
    %c0_i32 = arith.constant 0 : i32
    %c8_i32_0 = arith.constant 8 : i32
    %1 = arith.addi %c0_i32, %c8_i32_0 : i32
    %c1_i32 = arith.constant 1 : i32
    scf.for %arg4 = %c0_i32 to %1 step %c1_i32  : i32 {
      %2 = arith.addi %0, %arg4 : i32
      %3 = arith.index_cast %2 : i32 to index
      %4 = memref.load %arg1[%3] : memref<16xi32, #tpu.memory_space<smem>>
      %5 = arith.index_cast %4 : i32 to index
      %c0 = arith.constant 0 : index
      %6 = vector.load %arg2[%5, %c0] : memref<64x128xf32, #tpu.memory_space<vmem>>, vector<1x128xf32>
      %cst = arith.constant 11.3137083 : f32
      %7 = vector.broadcast %cst : f32 to vector<1x128xf32>
      %8 = arith.mulf %6, %7 : vector<1x128xf32>
      %9 = arith.index_cast %arg4 : i32 to index
      %c0_2 = arith.constant 0 : index
      %10 = vector.load %arg3[%9, %c0_2] : memref<8x128xf32, #tpu.memory_space<vmem>>, vector<1x128xf32>
      tpu.vector_store %arg3[%9, %c0_2], %8 {strides = array<i32>} : memref<8x128xf32, #tpu.memory_space<vmem>>, vector<1x128xf32>,
    }
    %c8_i32_1 = arith.constant 8 : i32
    return
  }
  func.func @transform_0(%arg0: i32, %arg1: memref<16xi32, #tpu.memory_space<smem>>) -> (i32, i32) {
    %c0_i32 = arith.constant 0 : i32
    %c0_i32_0 = arith.constant 0 : i32
    %c0_i32_1 = arith.constant 0 : i32
    return %c0_i32, %c0_i32_0 : i32, i32
  }
  func.func @transform_1(%arg0: i32, %arg1: memref<16xi32, #tpu.memory_space<smem>>) -> (i32, i32) {
    %c0_i32 = arith.constant 0 : i32
    %c0_i32_0 = arith.constant 0 : i32
    return %arg0, %c0_i32 : i32, i32
  }
}

</mosaic_0001>

<bundles_post_ra>
// kernel: tpu_custom_call.1
= control target key start
LH: loop header
LB: loop body
LE: loop exit
PB: predicated region body
PF: predicated region fallthrough
CT: control target
= control target key end

     0   :  { %s554_s0 = inlined_call_operand.hbm [shape: s32[16], index: 0, kind: input, shape index: {}]   ;;  %s555_s1 = inlined_call_operand.hbm [shape: f32[64,128], index: 1, kind: input, shape index: {}]   ;;  %s556_s2 = inlined_call_operand.hbm [shape: f32[16,128], index: 2, kind: output, shape index: {}]  }
   0x1   :  { %s281_s11 = scalar_lea.hbm %s554_s0, 16 }
   0x2   :  { %p282_p0 = scmp.ne.s32.totalorder %s554_s0, %s281_s11  ;;  %p285_p1 = scmp.lt.u32.totalorder %s281_s11, %s554_s0 }
   0x4   :  { %p287_p2 = pnand %p285_p1, %p282_p0 }
   0x6   :  { %290 = shalt.err (!%p287_p2)  }
   0x7   :  { %s397_s16 = smov [#allocation3]  }
   0x8   :  { %8 = dma.hbm_to_smem %s554_s0, 16, %s397_s16, [#allocation2] }
   0x9   :  { %367 = dma.done.wait [#allocation2], 16 }
   0xa   :  { %368 = vsyncadd [#allocation2], 4294967280 }
   0xb   :  { %10 = sfence }
   0xc   :  { %11 = vsyncpa [#allocation5], 0 }
   0xd   :  { %12 = vsyncpa [#allocation6], 0 }
   0xe   :  { %14 = vsyncpa [#allocation6 + $0x1], 0  ;;  %s429_s19 = smov 0   ;;  %s431_s20 = smov 0  }
   0xf   :  { %s433_s21 = smov 0   ;;  %s435_s22 = smov 0  }
  0x10 LB: > { %s450_s0 = sadd.s32 4294967295, %s391_s22   ;;  %s209_s23 = sadd.s32 4294967294, %s391_s22   ;;  %s391_s22 = sphi %s435_s22, %s572_s22   ;;  %s387_s21 = sphi %s433_s21, %s571_s21   ;;  %s383_s20 = sphi %s431_s20, %s570_s20   ;;  %s379_s19 = sphi %s429_s19, %s569_s19  }
  0x11   : > { %s454_s24 = sadd.s32 1, %s391_s22   ;;  %s48_s25 = sadd.s32 1, %s387_s21 }
  0x12   : > { %s45_s26 = ssub.s32 %s391_s22, %s454_s24  ;;  %p58_p3 = scmp.ne.s32.totalorder %s387_s21, %s383_s20 }
  0x13   : > { %p46_p4 = scmp.eq.s32.totalorder %s45_s26, 0  ;;  %p59_p5 = scmp.eq.s32.totalorder %s450_s0, 1 }
  0x14   : > { %p64_p6 = scmp.ne.s32.totalorder %s383_s20, %s379_s19  ;;  %p65_p7 = scmp.eq.s32.totalorder %s209_s23, 1 }
  0x15   : > { %s465_s27 = scalar_select %p46_p4, %s387_s21, %s48_s25  }
  0x16   : > { %p467_p8 = por %p59_p5, %p58_p3  ;;  %p471_p9 = por %p65_p7, %p64_p6 }
  0x17   : > { %p210_p10 = scmp.ge.s32.totalorder %s391_s22, 1  ;;  %p72_p11 = scmp.lt.s32.totalorder %s391_s22, 3 }
  0x18   : > { %s560_s28 = scalar_select %p467_p8, 1, 0 }
  0x19   : > { %s561_s29 = scalar_select %p471_p9, 1, 0 }
  0x1a   : > { %p557_p12 = scmp.eq.s32.totalorder %s450_s0, 0  ;;  %p478_p13 = pnand %p210_p10, %p72_p11 }
  0x1b   : > { %s398_s3 = smov [#allocation4]   ;;  %s291_s8 = scalar_lea.hbm %s555_s1, 1024 }
  0x1c   : > { %s562_s30 = scalar_select %p478_p13, 1, 0 }
  0x1d   : > { %s84_s4 = sshll.u32 %s398_s3, 4  ;;  %p226_p0 = pneg %p478_p13  ;;  %s85_s4 = int_to_ptr.vmem [resolvable:$true] %s84_s4 }
  0x1e   : > { %p292_p2 = scmp.ne.s32.totalorder %s555_s1, %s291_s8  ;;  %p298_p6 = scmp.lt.u32.totalorder %s291_s8, %s555_s1 }
  0x1f   : > { %p486_p1 = pnand %p557_p12, %p226_p0 }
  0x21   : > { %p293_p3 = pneg %p486_p1 }
  0x23   : > { %p294_p4 = pnand %p293_p3, %p292_p2 }
  0x25   : > { %p295_p5 = pneg %p294_p4 }
  0x27   : > { %p300_p7 = pnand %p298_p6, %p295_p5 }
  0x29   : > { %303 = shalt.err (!%p300_p7)
}
  0x2a   : > { %s304_s13 = scalar_lea.vmem %s85_s4, 1024  ;;  %p312_p12 = scmp.lt.s32.totalorder %s85_s4, %s85_s4 }
  0x2b   : > { %p305_p10 = scmp.ne.s32.totalorder %s85_s4, %s304_s13  ;;  %p313_p9 = scmp.lt.s32.totalorder %s304_s13, %s304_s13 }
  0x2d   : > { %p307_p11 = pnand %p305_p10, %p293_p3  ;;  %p314_p8 = por %p313_p9, %p312_p12 }
  0x2f   : > { %p308_p0 = pneg %p307_p11 }
  0x31   : > { %p315_p13 = pnand %p314_p8, %p308_p0 }
  0x33   : > { %318 = shalt.err (!%p315_p13)
}
  0x34   : > { %s399_s14 = smov 128   ;;  %s400_s15 = smov 8  }
  0x35   : > { %229 = dma.hbm_to_vmem [thread:$0]  (!%p486_p1), %s555_s1, 1024, %s85_s4, [#allocation5], %s399_s14, %s399_s14, %s400_s15  }
  0x36   : > { %p564_p2 = scmp.ne.s32.totalorder %s562_s30, 0 }
  0x37   : > { %p565_p4 = scmp.eq.s32.totalorder (!%p564_p2), %s450_s0, 0 }
  0x38   : > { %100 = sbr.rel (%p564_p2) target bundleno = 96 (0x60), region = 24 }
  0x3f   : > { %370 = dma.done.wait (%p565_p4), [#allocation5], 1024   ;;  %p566_p3 = pmov %p565_p4 }
  0x40   : > { %s112_s18 = sand.u32 1, %s383_s20   ;;  %s215_s23 = sshll.u32 %s450_s0, 3 }
  0x41   : > { %372 = vsyncadd (%p566_p3), [#allocation5], 4294966272  ;;  %s214_s25 = sshll.u32 %s112_s18, 3  ;;  %s393_s3 = smov 0  }
  0x42   : > { %s114_s26 = scalar_lea.vmem [#allocation7], %s214_s25 }
  0x43 LB: >> { %s122_s4 = sadd.s32 %s395_s3, %s215_s23  ;;  %s127_s6 = scalar_lea.vmem %s114_s26, %s395_s3 [#allocation7]  ;;  %s395_s3 = sphi %s393_s3, %s121_s3  }
  0x44   : >> { %s123_s5 = sld [smem:[#allocation3 + %s122_s4]]  ;;  %s121_s3 = sadd.s32 1, %s395_s3  }
  0x45   : >> { %p118_p8 = scmp.ge.s32.totalorder %s121_s3, 8  }
  0x46   : > { %s217_s7 = sshll.u32 (%p118_p8), %s450_s0, 7  ;;  %s143_s11 = sshll.u32 (%p118_p8), %s114_s26, 4  ;;  %s144_s11 = int_to_ptr.vmem [resolvable:$true] %s143_s11 }
  0x47   : > { %s518_s10 = scalar_lea.hbm (%p118_p8), %s556_s2, %s217_s7  ;;  %s130_s12 = scalar_lea.sflag (%p118_p8), [#allocation6], %s112_s18 }
  0x48   : > { %120 = sbr.rel (!%p118_p8) target bundleno = 67 (0x43), region = 70  ;;  %s319_s13 = scalar_lea.vmem (%p118_p8), %s144_s11, 128 }
  0x49   : > { %p320_p9 = scmp.ne.s32.totalorder (%p118_p8), %s144_s11, %s319_s13  ;;  %p567_p12 = scmp.ne.s32.totalorder (%p118_p8), %s560_s28, 0 }
  0x4a   : >> { %s124_s30 = scalar_lea.vmem [#allocation4], %s123_s5  ;;  %s401_s14 = smov (%p118_p8), [#allocation7]  }
  0x4b   : >> { %v125_v0 = vld [vmem:[%s124_s30] sm:$0x1]  ;;  %p321_p13 = pnand (%p118_p8), %p320_p9, %p567_p12  ;;  %s323_s15 = sshll.u32 (%p118_p8), %s401_s14, 4  ;;  %s324_s15 = int_to_ptr.vmem [resolvable:$false] %s323_s15 }
  0x4c   : >> { %v126_v1 = vmul.f32 11.313708, %v125_v0  ;;  %s325_s16 = scalar_lea.vmem (%p118_p8), %s324_s15, 256  ;;  %p326_p5 = scmp.lt.s32.totalorder (%p118_p8), %s144_s11, %s324_s15 }
  0x4d   : > { %p322_p1 = pneg (%p118_p8), %p321_p13  ;;  %p327_p6 = scmp.lt.s32.totalorder (%p118_p8), %s325_s16, %s319_s13 }
  0x4e   : >> { %128 = vst [vmem:[%s127_s6] sm:$0x1] %v126_v1 }
  0x4f   : > { %p328_p7 = por %p327_p6, %p326_p5 }
  0x51   : > { %p329_p10 = pnand %p328_p7, %p322_p1 }
  0x53   : > { %332 = shalt.err (!%p329_p10)
}
  0x54   : > { %s333_s0 = scalar_lea.hbm %s518_s10, 128  ;;  %s337_s23 = scalar_lea.hbm %s556_s2, 256 }
  0x55   : > { %p334_p11 = scmp.ne.s32.totalorder %s518_s10, %s333_s0  ;;  %p338_p4 = scmp.lt.u32.totalorder %s518_s10, %s556_s2 }
  0x56   : > { %p339_p3 = scmp.lt.u32.totalorder %s337_s23, %s333_s0  ;;  %p341_p9 = scmp.lt.u32.totalorder %s333_s0, %s518_s10 }
  0x57   : > { %p335_p0 = pnand %p334_p11, %p567_p12 }
  0x58   : > { %p340_p8 = por %p339_p3, %p338_p4 }
  0x59   : > { %p336_p2 = pneg %p335_p0 }
  0x5a   : > { %p342_p13 = por %p341_p9, %p340_p8 }
  0x5c   : > { %p343_p1 = pnand %p342_p13, %p336_p2 }
  0x5e   : > { %346 = shalt.err (!%p343_p1)
}
  0x5f   : > { %224 = dma.vmem_to_hbm [thread:$0]  (%p567_p12), %s144_s11, 128, %s518_s10, %s130_s12  }
  0x60 PF: > { %p236_p5 = scmp.ge.s32.totalorder %s391_s22, 2  ;;  %s155_s3 = sand.u32 1, %s379_s19  }
  0x61   : > { %p568_p6 = scmp.ne.s32.totalorder %s561_s29, 0  ;;  %s156_s4 = scalar_lea.sflag [#allocation6], %s155_s3 }
  0x63   : > { %p231_p7 = pnand %p236_p5, %p568_p6 }
  0x65   : > { %374 = dma.done.wait (!%p231_p7), %s156_s4, 128  }
  0x66   : > { %376 = vsyncadd (!%p231_p7), %s156_s4, 4294967168  ;;  %p17_p10 = scmp.ge.s32.totalorder %s454_s24, 4   ;;  %s569_s19 = smov %s383_s20 }
  0x67   : > { %s570_s20 = smov %s387_s21  ;;  %s571_s21 = smov %s465_s27 }
  0x68   : > { %s572_s22 = smov %s454_s24  ;;  %19 = sbr.rel (!%p17_p10) target bundleno = 16 (0x10), region = 81 }
  0x6f   :  { %161 = vsyncpa [#allocation5], 1 }
  0x70   :  { %163 = vsyncpa [#allocation5 + $0x1], 1 }
  0x71   :  { %164 = vsyncpa [#allocation6], 1 }
  0x72   :  { %166 = vsyncpa [#allocation6 + $0x1], 1 }

// kernel: tpu_custom_call.1
= control target key start
LH: loop header
LB: loop body
LE: loop exit
PB: predicated region body
PF: predicated region fallthrough
CT: control target
= control target key end

     0   :  { %s554_s0 = inlined_call_operand.hbm [shape: s32[16], index: 0, kind: input, shape index: {}]   ;;  %s555_s1 = inlined_call_operand.hbm [shape: f32[64,128], index: 1, kind: input, shape index: {}]   ;;  %s556_s2 = inlined_call_operand.hbm [shape: f32[16,128], index: 2, kind: output, shape index: {}]  }
   0x1   :  { %s281_s11 = scalar_lea.hbm %s554_s0, 16 }
   0x2   :  { %p282_p0 = scmp.ne.s32.totalorder %s554_s0, %s281_s11  ;;  %p285_p1 = scmp.lt.u32.totalorder %s281_s11, %s554_s0 }
   0x4   :  { %p287_p2 = pnand %p285_p1, %p282_p0 }
   0x6   :  { %290 = shalt.err (!%p287_p2)  }
   0x7   :  { %s397_s16 = smov [#allocation3]  }
   0x8   :  { %8 = dma.hbm_to_smem %s554_s0, 16, %s397_s16, [#allocation2] }
   0x9   :  { %367 = dma.done.wait [#allocation2], 16 }
   0xa   :  { %368 = vsyncadd [#allocation2], 4294967280 }
   0xb   :  { %10 = sfence }
   0xc   :  { %11 = vsyncpa [#allocation5], 0 }
   0xd   :  { %12 = vsyncpa [#allocation6], 0 }
   0xe   :  { %14 = vsyncpa [#allocation6 + $0x1], 0  ;;  %s429_s19 = smov 0   ;;  %s431_s20 = smov 0  }
   0xf   :  { %s433_s21 = smov 0   ;;  %s435_s22 = smov 0  }
  0x10 LB: > { %s450_s0 = sadd.s32 4294967295, %s391_s22   ;;  %s209_s23 = sadd.s32 4294967294, %s391_s22   ;;  %s391_s22 = sphi %s435_s22, %s572_s22   ;;  %s387_s21 = sphi %s433_s21, %s571_s21   ;;  %s383_s20 = sphi %s431_s20, %s570_s20   ;;  %s379_s19 = sphi %s429_s19, %s569_s19  }
  0x11   : > { %s454_s24 = sadd.s32 1, %s391_s22   ;;  %s48_s25 = sadd.s32 1, %s387_s21 }
  0x12   : > { %s45_s26 = ssub.s32 %s391_s22, %s454_s24  ;;  %p58_p3 = scmp.ne.s32.totalorder %s387_s21, %s383_s20 }
  0x13   : > { %p46_p4 = scmp.eq.s32.totalorder %s45_s26, 0  ;;  %p59_p5 = scmp.eq.s32.totalorder %s450_s0, 1 }
  0x14   : > { %p64_p6 = scmp.ne.s32.totalorder %s383_s20, %s379_s19  ;;  %p65_p7 = scmp.eq.s32.totalorder %s209_s23, 1 }
  0x15   : > { %s465_s27 = scalar_select %p46_p4, %s387_s21, %s48_s25  }
  0x16   : > { %p467_p8 = por %p59_p5, %p58_p3  ;;  %p471_p9 = por %p65_p7, %p64_p6 }
  0x17   : > { %p210_p10 = scmp.ge.s32.totalorder %s391_s22, 1  ;;  %p72_p11 = scmp.lt.s32.totalorder %s391_s22, 3 }
  0x18   : > { %s560_s28 = scalar_select %p467_p8, 1, 0 }
  0x19   : > { %s561_s29 = scalar_select %p471_p9, 1, 0 }
  0x1a   : > { %p557_p12 = scmp.eq.s32.totalorder %s450_s0, 0  ;;  %p478_p13 = pnand %p210_p10, %p72_p11 }
  0x1b   : > { %s398_s3 = smov [#allocation4]   ;;  %s291_s8 = scalar_lea.hbm %s555_s1, 1024 }
  0x1c   : > { %s562_s30 = scalar_select %p478_p13, 1, 0 }
  0x1d   : > { %s84_s4 = sshll.u32 %s398_s3, 4  ;;  %p226_p0 = pneg %p478_p13  ;;  %s85_s4 = int_to_ptr.vmem [resolvable:$true] %s84_s4 }
  0x1e   : > { %p292_p2 = scmp.ne.s32.totalorder %s555_s1, %s291_s8  ;;  %p298_p6 = scmp.lt.u32.totalorder %s291_s8, %s555_s1 }
  0x1f   : > { %p486_p1 = pnand %p557_p12, %p226_p0 }
  0x21   : > { %p293_p3 = pneg %p486_p1 }
  0x23   : > { %p294_p4 = pnand %p293_p3, %p292_p2 }
  0x25   : > { %p295_p5 = pneg %p294_p4 }
  0x27   : > { %p300_p7 = pnand %p298_p6, %p295_p5 }
  0x29   : > { %303 = shalt.err (!%p300_p7)
}
  0x2a   : > { %s304_s13 = scalar_lea.vmem %s85_s4, 1024  ;;  %p312_p12 = scmp.lt.s32.totalorder %s85_s4, %s85_s4 }
  0x2b   : > { %p305_p10 = scmp.ne.s32.totalorder %s85_s4, %s304_s13  ;;  %p313_p9 = scmp.lt.s32.totalorder %s304_s13, %s304_s13 }
  0x2d   : > { %p307_p11 = pnand %p305_p10, %p293_p3  ;;  %p314_p8 = por %p313_p9, %p312_p12 }
  0x2f   : > { %p308_p0 = pneg %p307_p11 }
  0x31   : > { %p315_p13 = pnand %p314_p8, %p308_p0 }
  0x33   : > { %318 = shalt.err (!%p315_p13)
}
  0x34   : > { %s399_s14 = smov 128   ;;  %s400_s15 = smov 8  }
  0x35   : > { %229 = dma.hbm_to_vmem [thread:$0]  (!%p486_p1), %s555_s1, 1024, %s85_s4, [#allocation5], %s399_s14, %s399_s14, %s400_s15  }
  0x36   : > { %p564_p2 = scmp.ne.s32.totalorder %s562_s30, 0 }
  0x37   : > { %p565_p4 = scmp.eq.s32.totalorder (!%p564_p2), %s450_s0, 0 }
  0x38   : > { %100 = sbr.rel (%p564_p2) target bundleno = 96 (0x60), region = 24 }
  0x3f   : > { %370 = dma.done.wait (%p565_p4), [#allocation5], 1024   ;;  %p566_p3 = pmov %p565_p4 }
  0x40   : > { %s112_s18 = sand.u32 1, %s383_s20   ;;  %s215_s23 = sshll.u32 %s450_s0, 3 }
  0x41   : > { %372 = vsyncadd (%p566_p3), [#allocation5], 4294966272  ;;  %s214_s25 = sshll.u32 %s112_s18, 3  ;;  %s393_s3 = smov 0  }
  0x42   : > { %s114_s26 = scalar_lea.vmem [#allocation7], %s214_s25 }
  0x43 LB: >> { %s122_s4 = sadd.s32 %s395_s3, %s215_s23  ;;  %s127_s6 = scalar_lea.vmem %s114_s26, %s395_s3 [#allocation7]  ;;  %s395_s3 = sphi %s393_s3, %s121_s3  }
  0x44   : >> { %s123_s5 = sld [smem:[#allocation3 + %s122_s4]]  ;;  %s121_s3 = sadd.s32 1, %s395_s3  }
  0x45   : >> { %p118_p8 = scmp.ge.s32.totalorder %s121_s3, 8  }
  0x46   : > { %s217_s7 = sshll.u32 (%p118_p8), %s450_s0, 7  ;;  %s143_s11 = sshll.u32 (%p118_p8), %s114_s26, 4  ;;  %s144_s11 = int_to_ptr.vmem [resolvable:$true] %s143_s11 }
  0x47   : > { %s518_s10 = scalar_lea.hbm (%p118_p8), %s556_s2, %s217_s7  ;;  %s130_s12 = scalar_lea.sflag (%p118_p8), [#allocation6], %s112_s18 }
  0x48   : > { %120 = sbr.rel (!%p118_p8) target bundleno = 67 (0x43), region = 70  ;;  %s319_s13 = scalar_lea.vmem (%p118_p8), %s144_s11, 128 }
  0x49   : > { %p320_p9 = scmp.ne.s32.totalorder (%p118_p8), %s144_s11, %s319_s13  ;;  %p567_p12 = scmp.ne.s32.totalorder (%p118_p8), %s560_s28, 0 }
  0x4a   : >> { %s124_s30 = scalar_lea.vmem [#allocation4], %s123_s5  ;;  %s401_s14 = smov (%p118_p8), [#allocation7]  }
  0x4b   : >> { %v125_v0 = vld [vmem:[%s124_s30] sm:$0x1]  ;;  %p321_p13 = pnand (%p118_p8), %p320_p9, %p567_p12  ;;  %s323_s15 = sshll.u32 (%p118_p8), %s401_s14, 4  ;;  %s324_s15 = int_to_ptr.vmem [resolvable:$false] %s323_s15 }
  0x4c   : >> { %v126_v1 = vmul.f32 11.313708, %v125_v0  ;;  %s325_s16 = scalar_lea.vmem (%p118_p8), %s324_s15, 256  ;;  %p326_p5 = scmp.lt.s32.totalorder (%p118_p8), %s144_s11, %s324_s15 }
  0x4d   : > { %p322_p1 = pneg (%p118_p8), %p321_p13  ;;  %p327_p6 = scmp.lt.s32.totalorder (%p118_p8), %s325_s16, %s319_s13 }
  0x4e   : >> { %128 = vst [vmem:[%s127_s6] sm:$0x1] %v126_v1 }
  0x4f   : > { %p328_p7 = por %p327_p6, %p326_p5 }
  0x51   : > { %p329_p10 = pnand %p328_p7, %p322_p1 }
  0x53   : > { %332 = shalt.err (!%p329_p10)
}
  0x54   : > { %s333_s0 = scalar_lea.hbm %s518_s10, 128  ;;  %s337_s23 = scalar_lea.hbm %s556_s2, 256 }
  0x55   : > { %p334_p11 = scmp.ne.s32.totalorder %s518_s10, %s333_s0  ;;  %p338_p4 = scmp.lt.u32.totalorder %s518_s10, %s556_s2 }
  0x56   : > { %p339_p3 = scmp.lt.u32.totalorder %s337_s23, %s333_s0  ;;  %p341_p9 = scmp.lt.u32.totalorder %s333_s0, %s518_s10 }
  0x57   : > { %p335_p0 = pnand %p334_p11, %p567_p12 }
  0x58   : > { %p340_p8 = por %p339_p3, %p338_p4 }
  0x59   : > { %p336_p2 = pneg %p335_p0 }
  0x5a   : > { %p342_p13 = por %p341_p9, %p340_p8 }
  0x5c   : > { %p343_p1 = pnand %p342_p13, %p336_p2 }
  0x5e   : > { %346 = shalt.err (!%p343_p1)
}
  0x5f   : > { %224 = dma.vmem_to_hbm [thread:$0]  (%p567_p12), %s144_s11, 128, %s518_s10, %s130_s12  }
  0x60 PF: > { %p236_p5 = scmp.ge.s32.totalorder %s391_s22, 2  ;;  %s155_s3 = sand.u32 1, %s379_s19  }
  0x61   : > { %p568_p6 = scmp.ne.s32.totalorder %s561_s29, 0  ;;  %s156_s4 = scalar_lea.sflag [#allocation6], %s155_s3 }
  0x63   : > { %p231_p7 = pnand %p236_p5, %p568_p6 }
  0x65   : > { %374 = dma.done.wait (!%p231_p7), %s156_s4, 128  }
  0x66   : > { %376 = vsyncadd (!%p231_p7), %s156_s4, 4294967168  ;;  %p17_p10 = scmp.ge.s32.totalorder %s454_s24, 4   ;;  %s569_s19 = smov %s383_s20 }
  0x67   : > { %s570_s20 = smov %s387_s21  ;;  %s571_s21 = smov %s465_s27 }
  0x68   : > { %s572_s22 = smov %s454_s24  ;;  %19 = sbr.rel (!%p17_p10) target bundleno = 16 (0x10), region = 81 }
  0x6f   :  { %161 = vsyncpa [#allocation5], 1 }
  0x70   :  { %163 = vsyncpa [#allocation5 + $0x1], 1 }
  0x71   :  { %164 = vsyncpa [#allocation6], 1 }
  0x72   :  { %166 = vsyncpa [#allocation6 + $0x1], 1 }

</bundles_post_ra>
